<compile_context>
chip_gen: v5e
topology: v5e:2x2
jax: 0.10.0
libtpu: 0.0.40
codegen_flags: <defaults>
</compile_context>

<pallas_src>
import math

import jax
import jax.numpy as jnp
from jax.experimental import pallas as pl
from jax.experimental.pallas import tpu as pltpu


# -----------------------------------------------------------------------------
# Kernel
# -----------------------------------------------------------------------------
def _nim_ann_packed_kernel(xp_ref, w1_ref, b1_ref, w2_ref, b2_ref, g_ref, o_ref):
    # In-kernel cast to the MXU dtype (no wrapper-side bf16 pass over x).
    x = xp_ref[...].astype(w1_ref.dtype)

    # Layer 1 (packed): (TBP, P*in) @ block_diag_P(W1) -> f32 accumulate.
    h = jnp.dot(x, w1_ref[...], preferred_element_type=jnp.float32)
    h = h + b1_ref[...]
    h = jnp.maximum(h, 0.0)

    # Layer 2 (packed): (TBP, P*hid) @ block_diag_P(W2) -> f32 accumulate.
    logits = jnp.dot(h.astype(w2_ref.dtype), w2_ref[...],
                     preferred_element_type=jnp.float32)
    logits = logits + b2_ref[...]

    # Softmax over each aligned group of `out_size` lanes (one group == one
    # sample). Stabilize with the packed-row max: it is constant within every
    # group, so the result is mathematically identical to per-sample max
    # subtraction (see correctness note in the wrapper docstring).
    m = jnp.max(logits, axis=-1, keepdims=True)
    e = jnp.exp(logits - m)
    # Segmented (per-sample) sum, broadcast back to every lane of its group,
    # in a single MXU op against the 0/1 group-indicator matrix G.
    denom = jnp.dot(e, g_ref[...], preferred_element_type=jnp.float32)
    # Approx reciprocal -> EUP slot (VALU stays free).
    o_ref[...] = (e * pl.reciprocal(denom, approx=True)).astype(o_ref.dtype)


# -----------------------------------------------------------------------------
# Wrapper
# -----------------------------------------------------------------------------
def _nbytes(a):
    return int(a.size) * a.dtype.itemsize


def _round_up(n, m):
    return ((n + m - 1) // m) * m


def _block_diag(w, p):
    # (a, b) -> (p*a, p*b) with p copies of w on the diagonal.
    return jnp.kron(jnp.eye(p, dtype=w.dtype), w)


def _vmem_limit_bytes():
    """Generation-aware VMEM budget (clamps correctly on v7x's 64 MiB)."""
    try:
        cap = int(pltpu.get_tpu_info().vmem_capacity_bytes)
    except Exception:  # conservative fallback if the query is unavailable
        cap = 64 * 1024 * 1024
    return max(16 * 1024 * 1024, min(cap // 2, 64 * 1024 * 1024))


def nim_ann_forward(x, w1, b1, w2, b2, *, matmul_dtype=jnp.bfloat16,
                    out_dtype=jnp.float32, max_packed_rows=4096):
    """Fused MLP + softmax, lane-packed.

    x  : (B, input_size) float32
    w1 : (input_size, 32),  b1 : (1, 32) or (32,)
    w2 : (32, output_size), b2 : (1, output_size) or (output_size,)
    Returns (B, output_size) probabilities (out_dtype, default f32).

    Numerics: matmul operands are bf16 with f32 accumulation; the softmax
    denominator uses an approximate reciprocal; stabilization subtracts the
    max over the P=128//out_size samples sharing a packed row (exact in real
    arithmetic; it can only misbehave if two samples in the same pack have
    logit scales differing by >~100, which the per-sample formulation would
    tolerate).
    """
    B, in_size = x.shape
    hid = w1.shape[1]
    out_size = w2.shape[1]

    # Pack P samples per row so that both the input and output tiles are
    # 128-lane dense. Falls back to P=1 (unpacked, still correct) if out_size
    # does not divide 128.
    P = 128 // out_size if (out_size <= 128 and 128 % out_size == 0) else 1

    B_pad = _round_up(B, P)
    if B_pad != B:
        # Zero rows; their (well-defined) outputs are sliced off below.
        x = jnp.pad(x, ((0, B_pad - B), (0, 0)))
    Bp = B_pad // P

    # Free row-major reinterpretation: packed row r = samples r*P .. r*P+P-1.
    xp = x.reshape(Bp, P * in_size)

    # Block-diagonal weights (tiny, built once per call), tiled biases, and the
    # per-group indicator matrix G (ones inside each out_size x out_size block).
    w1_big = _block_diag(w1.astype(matmul_dtype), P)          # (P*in,  P*hid)
    w2_big = _block_diag(w2.astype(matmul_dtype), P)          # (P*hid, P*out)
    b1_big = jnp.tile(b1.reshape(1, hid).astype(jnp.float32), (1, P))
    b2_big = jnp.tile(b2.reshape(1, out_size).astype(jnp.float32), (1, P))
    grp = jnp.arange(P * out_size) // out_size
    g = (grp[:, None] == grp[None, :]).astype(jnp.float32)    # (P*out, P*out)

    # ---- generation-aware tile sizing -------------------------------------
    vmem_limit = _vmem_limit_bytes()
    lanes_in = _round_up(P * in_size, 128)
    lanes_hid = _round_up(P * hid, 128)
    lanes_out = _round_up(P * out_size, 128)
    bytes_per_prow = (
        2 * lanes_in * 4          # x tile (f32), double-buffered
        + 2 * lanes_out * 4       # output tile, double-buffered
        + lanes_in * 2            # bf16 copy of x
        + lanes_hid * (4 + 2)     # h (f32) + h (bf16)
        + 4 * lanes_out * 4       # logits / e / denom / scaled temporaries
    )
    resident_bytes = 2 * (_nbytes(w1_big) + _nbytes(w2_big) + _nbytes(g)
                          + _nbytes(b1_big) + _nbytes(b2_big))
    usable = max(bytes_per_prow, int(0.55 * (vmem_limit - resident_bytes)))
    tbp_cap = max(8, min(max_packed_rows, (usable // bytes_per_prow) // 8 * 8))
    tbp = Bp if Bp <= tbp_cap else tbp_cap
    grid = (pl.cdiv(Bp, tbp),)

    def resident_spec(a):
        return pl.BlockSpec(a.shape, lambda i: (0,) * a.ndim)

    out_packed = pl.pallas_call(
        _nim_ann_packed_kernel,
        out_shape=jax.ShapeDtypeStruct((Bp, P * out_size), out_dtype),
        grid=grid,
        in_specs=[
            # x: batch-tiled, lane-dense. (Default double-buffering; switch to
            # pipeline_mode=pl.Buffered(3) only if a profile shows exposed DMA.)
            pl.BlockSpec((tbp, P * in_size), lambda i: (i, 0)),
            resident_spec(w1_big), resident_spec(b1_big),
            resident_spec(w2_big), resident_spec(b2_big),
            resident_spec(g),
        ],
        out_specs=pl.BlockSpec((tbp, P * out_size), lambda i: (i, 0)),
        compiler_params=pltpu.CompilerParams(
            dimension_semantics=("parallel",),   # v7x: batch tiles across TCs
            vmem_limit_bytes=vmem_limit),
    )(xp, w1_big, b1_big, w2_big, b2_big, g)

    # Free reshape back to (B_pad, out); drop the padded rows if any.
    probs = out_packed.reshape(B_pad, out_size)
    if B_pad != B:
        probs = probs[:B]
    return probs


# -----------------------------------------------------------------------------
# Parameter init + references (PyTorch-equivalent semantics)
# -----------------------------------------------------------------------------
def init_params(key, input_size, hidden_size, output_size):
    """Mimics PyTorch nn.Linear default init: U(-1/sqrt(fan_in), 1/sqrt(fan_in)).
    Weights stored as (in, out) = transpose of PyTorch's (out, in) layout."""
    k1, k2, k3, k4 = jax.random.split(key, 4)
    bound1 = 1.0 / math.sqrt(input_size)
    bound2 = 1.0 / math.sqrt(hidden_size)
    w1 = jax.random.uniform(k1, (input_size, hidden_size), jnp.float32,
                            -bound1, bound1)
    b1 = jax.random.uniform(k2, (1, hidden_size), jnp.float32, -bound1, bound1)
    w2 = jax.random.uniform(k3, (hidden_size, output_size), jnp.float32,
                            -bound2, bound2)
    b2 = jax.random.uniform(k4, (1, output_size), jnp.float32, -bound2, bound2)
    return w1, b1, w2, b2


def reference_forward_f32(x, w1, b1, w2, b2):
    h = jnp.maximum(x @ w1 + b1, 0.0)
    logits = h @ w2 + b2
    return jax.nn.softmax(logits, axis=-1)


def reference_forward_matched(x, w1, b1, w2, b2, matmul_dtype=jnp.bfloat16):
    """Same bf16-operand / f32-accumulate recipe as the kernel."""
    h = jnp.dot(x.astype(matmul_dtype), w1.astype(matmul_dtype),
                preferred_element_type=jnp.float32) + b1
    h = jnp.maximum(h, 0.0)
    logits = jnp.dot(h.astype(matmul_dtype), w2.astype(matmul_dtype),
                     preferred_element_type=jnp.float32) + b2
    return jax.nn.softmax(logits, axis=-1)


if __name__ == "__main__":
    input_size = 16   # NimANN(input_size, output_size); conv_output_size == input_size
    hidden_size = 32  # fixed by the module's nn.Linear(conv_output_size, 32)
    output_size = 8
    batch = 8         # small demo batch (exercises the pad-to-pack path)

    key = jax.random.PRNGKey(0)
    kx, kp, kx2 = jax.random.split(key, 3)
    x = jax.random.normal(kx, (batch, input_size), jnp.float32)
    w1, b1, w2, b2 = init_params(kp, input_size, hidden_size, output_size)

    probs = nim_ann_forward(x, w1, b1, w2, b2)
    probs = jax.block_until_ready(probs)

    ref_matched = reference_forward_matched(x, w1, b1, w2, b2)
    ref_f32 = reference_forward_f32(x, w1, b1, w2, b2)

    assert probs.shape == (batch, output_size)
    # Rows sum to 1 (approx reciprocal introduces a tiny deviation).
    assert bool(jnp.allclose(jnp.sum(probs, axis=-1), 1.0, atol=1e-2))
    # Matches the same-precision reference closely ...
    assert bool(jnp.allclose(probs, ref_matched, atol=1e-2, rtol=1e-2))
    # ... and the pure-f32 PyTorch-equivalent reference within bf16 tolerance.
    assert bool(jnp.allclose(probs, ref_f32, atol=3e-2, rtol=3e-2))

    # Second check: batch that is a multiple of the pack factor (no padding,
    # multiple packed rows).
    x2 = jax.random.normal(kx2, (64, input_size), jnp.float32)
    probs2 = jax.block_until_ready(nim_ann_forward(x2, w1, b1, w2, b2))
    ref2 = reference_forward_matched(x2, w1, b1, w2, b2)
    assert probs2.shape == (64, output_size)
    assert bool(jnp.allclose(jnp.sum(probs2, axis=-1), 1.0, atol=1e-2))
    assert bool(jnp.allclose(probs2, ref2, atol=1e-2, rtol=1e-2))

    print("KERNEL_OK")
</pallas_src>

<mosaic_0001>
module attributes {stable_mosaic.version = 11 : i64} {
  func.func @_nim_ann_packed_kernel(%arg0: i32, %arg1: memref<1x256xf32, #tpu.memory_space<vmem>>, %arg2: memref<256x512xbf16, #tpu.memory_space<vmem>>, %arg3: memref<1x512xf32, #tpu.memory_space<vmem>>, %arg4: memref<512x128xbf16, #tpu.memory_space<vmem>>, %arg5: memref<1x128xf32, #tpu.memory_space<vmem>>, %arg6: memref<128x128xf32, #tpu.memory_space<vmem>>, %arg7: memref<1x128xf32, #tpu.memory_space<vmem>>) attributes {dimension_semantics = [#tpu.dimension_semantics<parallel>], iteration_bounds = array<i64: 1>, scalar_prefetch = 0 : i64, scratch_operands = 0 : i64, tpu.core_type = #tpu.core_type<tc>, window_params = [{transform_indices = @transform_0, window_bounds = array<i64: 1, 256>}, {pipeline_mode = #tpu.pipeline_mode<synchronous>, transform_indices = @transform_1, window_bounds = array<i64: 256, 512>}, {pipeline_mode = #tpu.pipeline_mode<synchronous>, transform_indices = @transform_2, window_bounds = array<i64: 1, 512>}, {pipeline_mode = #tpu.pipeline_mode<synchronous>, transform_indices = @transform_3, window_bounds = array<i64: 512, 128>}, {pipeline_mode = #tpu.pipeline_mode<synchronous>, transform_indices = @transform_4, window_bounds = array<i64: 1, 128>}, {pipeline_mode = #tpu.pipeline_mode<synchronous>, transform_indices = @transform_5, window_bounds = array<i64: 128, 128>}, {transform_indices = @transform_6, window_bounds = array<i64: 1, 128>}]} {
    %c0 = arith.constant 0 : index
    %c0_0 = arith.constant 0 : index
    %0 = vector.load %arg1[%c0, %c0_0] : memref<1x256xf32, #tpu.memory_space<vmem>>, vector<1x256xf32>
    %1 = arith.truncf %0 : vector<1x256xf32> to vector<1x256xbf16>
    %c0_1 = arith.constant 0 : index
    %c0_2 = arith.constant 0 : index
    %2 = vector.load %arg2[%c0_1, %c0_2] : memref<256x512xbf16, #tpu.memory_space<vmem>>, vector<256x512xbf16>
    %cst = arith.constant dense<0.000000e+00> : vector<1x512xf32>
    %3 = tpu.matmul %1, %2, %cst {dimension_numbers = #tpu.dot_dimension_numbers<[1], [0], [0], [1], [0, 0, 1, 1], [], []>} : vector<1x256xbf16>, vector<256x512xbf16>, vector<1x512xf32> -> vector<1x512xf32>
    %c0_3 = arith.constant 0 : index
    %c0_4 = arith.constant 0 : index
    %4 = vector.load %arg3[%c0_3, %c0_4] : memref<1x512xf32, #tpu.memory_space<vmem>>, vector<1x512xf32>
    %5 = arith.addf %3, %4 : vector<1x512xf32>
    %cst_5 = arith.constant 0.000000e+00 : f32
    %6 = vector.broadcast %cst_5 : f32 to vector<1x512xf32>
    %7 = arith.maximumf %5, %6 : vector<1x512xf32>
    %8 = arith.truncf %7 : vector<1x512xf32> to vector<1x512xbf16>
    %c0_6 = arith.constant 0 : index
    %c0_7 = arith.constant 0 : index
    %9 = vector.load %arg4[%c0_6, %c0_7] : memref<512x128xbf16, #tpu.memory_space<vmem>>, vector<512x128xbf16>
    %cst_8 = arith.constant dense<0.000000e+00> : vector<1x128xf32>
    %10 = tpu.matmul %8, %9, %cst_8 {dimension_numbers = #tpu.dot_dimension_numbers<[1], [0], [0], [1], [0, 0, 1, 1], [], []>} : vector<1x512xbf16>, vector<512x128xbf16>, vector<1x128xf32> -> vector<1x128xf32>
    %c0_9 = arith.constant 0 : index
    %c0_10 = arith.constant 0 : index
    %11 = vector.load %arg5[%c0_9, %c0_10] : memref<1x128xf32, #tpu.memory_space<vmem>>, vector<1x128xf32>
    %12 = arith.addf %10, %11 : vector<1x128xf32>
    %cst_11 = arith.constant dense<0xFF800000> : vector<1xf32>
    %13 = vector.multi_reduction <maximumf>, %12, %cst_11 [1] : vector<1x128xf32> to vector<1xf32>
    %14 = vector.shape_cast %13 : vector<1xf32> to vector<1x1xf32>
    %15 = vector.broadcast %14 : vector<1x1xf32> to vector<1x128xf32>
    %16 = arith.subf %12, %15 : vector<1x128xf32>
    %17 = math.exp %16 : vector<1x128xf32>
    %c0_12 = arith.constant 0 : index
    %c0_13 = arith.constant 0 : index
    %18 = vector.load %arg6[%c0_12, %c0_13] : memref<128x128xf32, #tpu.memory_space<vmem>>, vector<128x128xf32>
    %cst_14 = arith.constant dense<0.000000e+00> : vector<1x128xf32>
    %19 = tpu.matmul %17, %18, %cst_14 {dimension_numbers = #tpu.dot_dimension_numbers<[1], [0], [0], [1], [0, 0, 1, 1], [], []>} : vector<1x128xf32>, vector<128x128xf32>, vector<1x128xf32> -> vector<1x128xf32>
    %20 = tpu.reciprocal %19 {approx = true} : vector<1x128xf32> -> vector<1x128xf32>
    %21 = arith.mulf %17, %20 : vector<1x128xf32>
    %c0_15 = arith.constant 0 : index
    %c0_16 = arith.constant 0 : index
    %22 = vector.load %arg7[%c0_15, %c0_16] : memref<1x128xf32, #tpu.memory_space<vmem>>, vector<1x128xf32>
    tpu.vector_store %arg7[%c0_15, %c0_16], %21 {strides = array<i32>} : memref<1x128xf32, #tpu.memory_space<vmem>>, vector<1x128xf32>,
    return
  }
  func.func @transform_0(%arg0: i32) -> (i32, i32) {
    %c0_i32 = arith.constant 0 : i32
    %c0_i32_0 = arith.constant 0 : i32
    return %arg0, %c0_i32 : i32, i32
  }
  func.func @transform_1(%arg0: i32) -> (i32, i32) {
    %c0_i32 = arith.constant 0 : i32
    %c0_i32_0 = arith.constant 0 : i32
    %c0_i32_1 = arith.constant 0 : i32
    return %c0_i32, %c0_i32_0 : i32, i32
  }
  func.func @transform_2(%arg0: i32) -> (i32, i32) {
    %c0_i32 = arith.constant 0 : i32
    %c0_i32_0 = arith.constant 0 : i32
    %c0_i32_1 = arith.constant 0 : i32
    return %c0_i32, %c0_i32_0 : i32, i32
  }
  func.func @transform_3(%arg0: i32) -> (i32, i32) {
    %c0_i32 = arith.constant 0 : i32
    %c0_i32_0 = arith.constant 0 : i32
    %c0_i32_1 = arith.constant 0 : i32
    return %c0_i32, %c0_i32_0 : i32, i32
  }
  func.func @transform_4(%arg0: i32) -> (i32, i32) {
    %c0_i32 = arith.constant 0 : i32
    %c0_i32_0 = arith.constant 0 : i32
    %c0_i32_1 = arith.constant 0 : i32
    return %c0_i32, %c0_i32_0 : i32, i32
  }
  func.func @transform_5(%arg0: i32) -> (i32, i32) {
    %c0_i32 = arith.constant 0 : i32
    %c0_i32_0 = arith.constant 0 : i32
    %c0_i32_1 = arith.constant 0 : i32
    return %c0_i32, %c0_i32_0 : i32, i32
  }
  func.func @transform_6(%arg0: i32) -> (i32, i32) {
    %c0_i32 = arith.constant 0 : i32
    %c0_i32_0 = arith.constant 0 : i32
    return %arg0, %c0_i32 : i32, i32
  }
}

</mosaic_0001>

<bundles_post_ra>
// kernel: tpu_custom_call.1
= control target key start
LH: loop header
LB: loop body
LE: loop exit
PB: predicated region body
PF: predicated region fallthrough
CT: control target
= control target key end

     0   :  { %11 = vsyncpa [#allocation3], 0  ;;  %s1714_s0 = inlined_call_operand.hbm [shape: f32[1,256], index: 0, kind: input, shape index: {}]   ;;  %s1715_s1 = inlined_call_operand.hbm [shape: bf16[256,512], index: 1, kind: input, shape index: {}]   ;;  %s1716_s2 = inlined_call_operand.hbm [shape: f32[1,512], index: 2, kind: input, shape index: {}]   ;;  %s1717_s3 = inlined_call_operand.hbm [shape: bf16[512,128], index: 3, kind: input, shape index: {}]   ;;  %s1718_s4 = inlined_call_operand.vmem [shape: f32[1,128], index: 4, kind: input, shape index: {}]   ;;  %s1719_s5 = inlined_call_operand.hbm [shape: f32[128,128], index: 5, kind: input, shape index: {}]   ;;  %s1720_s6 = inlined_call_operand.hbm [shape: f32[1,128], index: 6, kind: output, shape index: {}]  }
   0x1   :  { %12 = vsyncpa [#allocation6], 0 }
   0x2   :  { %13 = vsyncpa [#allocation9], 0  ;;  %s30_s23 = sshll.u32 %s1715_s1, 4  ;;  %s31_s23 = int_to_ptr.hbm [resolvable:$true] %s30_s23 }
   0x3   :  { %14 = vsyncpa [#allocation4], 0  ;;  %s1634_s24 = smov [#allocation5]   ;;  %s54_s28 = sshll.u32 %s1717_s3, 4  ;;  %s55_s28 = int_to_ptr.hbm [resolvable:$true] %s54_s28 }
   0x4   :  { %s32_s25 = sshll.u32 %s1634_s24, 4  ;;  %s1635_s29 = smov 256   ;;  %s33_s25 = int_to_ptr.vmem [resolvable:$true] %s32_s25 }
   0x5   :  { %s1636_s30 = smov 16   ;;  %s1637_s7 = smov [#allocation8]  }
   0x6   :  { %38 = dma.hbm_to_vmem [thread:$0]  %s31_s23, 8192, %s33_s25, [#allocation6], %s1635_s29, %s1635_s29, %s1636_s30  }
   0x7   :  { %s56_s8 = sshll.u32 %s1637_s7, 4  ;;  %s1638_s9 = smov 64   ;;  %s57_s8 = int_to_ptr.vmem [resolvable:$true] %s56_s8 }
   0x8   :  { %s1639_s10 = smov 4   ;;  %s20_s12 = sshll.u32 %s1714_s0, 4  ;;  %s21_s12 = int_to_ptr.hbm [resolvable:$true] %s20_s12 }
   0x9   :  { %62 = dma.hbm_to_vmem [thread:$0]  %s55_s28, 4096, %s57_s8, [#allocation9], %s1638_s9, %s1638_s9, %s1639_s10  }
   0xa   :  { %s1640_s13 = smov [#allocation2]   ;;  %s44_s16 = sshll.u32 %s1716_s2, 4  ;;  %s45_s16 = int_to_ptr.hbm [resolvable:$true] %s44_s16 }
   0xb   :  { %s22_s14 = sshll.u32 %s1640_s13, 4  ;;  %s1641_s17 = smov [#allocation7]   ;;  %s23_s14 = int_to_ptr.vmem [resolvable:$true] %s22_s14 }
   0xc   :  { %25 = dma.hbm_to_vmem [thread:$0]  %s21_s12, 32, %s23_s14, [#allocation3]  }
   0xd   :  { %s46_s18 = sshll.u32 %s1641_s17, 4  ;;  %s69_s21 = sshll.u32 %s1719_s5, 4  ;;  %s47_s18 = int_to_ptr.vmem [resolvable:$true] %s46_s18  ;;  %s70_s21 = int_to_ptr.hbm [resolvable:$true] %s69_s21 }
   0xe   :  { %49 = dma.hbm_to_vmem [thread:$0]  %s45_s16, 64, %s47_s18, [#allocation6]  }
   0xf   :  { %s1642_s0 = smov [#allocation10]   ;;  %s1643_s23 = smov 128  }
  0x10   :  { %s71_s22 = sshll.u32 %s1642_s0, 4  ;;  %s1644_s24 = smov 8   ;;  %s72_s22 = int_to_ptr.vmem [resolvable:$true] %s71_s22 }
  0x11   :  { %77 = dma.hbm_to_vmem [thread:$0]  %s70_s21, 2048, %s72_s22, [#allocation9], %s1643_s23, %s1643_s23, %s1644_s24  }
  0x12   :  { %1626 = dma.done.wait [#allocation3], 32  }
  0x13   :  { %1627 = vsyncadd [#allocation3], 4294967264 }
  0x14   :  { %1628 = dma.done.wait [#allocation6], 8256  }
  0x15   :  { %1629 = vsyncadd [#allocation6], 4294959040 }
  0x16   :  { %1630 = dma.done.wait [#allocation9], 6144  }
  0x17   :  { %1631 = vsyncadd [#allocation9], 4294961152  ;;  %v1100_v0 = vld [vmem:[#allocation5 + $0xe0] sm:$0xf]  ;;  %v1400_v1 = vld [vmem:[#allocation5 + $0xec] sm:$0xf0] }
  0x18   :  { %v1228_v2 = vld [vmem:[#allocation5 + $0x1e0] sm:$0xf]  ;;  %v1101_v3 = vor.u32 %v1400_v1, %v1100_v0  ;;  %v1432_v4 = vld [vmem:[#allocation5 + $0x1ec] sm:$0xf0]  ;;  %v1398_v5 = vld [vmem:[#allocation5 + $0xe4] sm:$0xf] }
  0x19   :  { %v1102_v6 = vld [vmem:[#allocation5 + $0xf0] sm:$0xf0]  ;;  %v1229_v7 = vor.u32 %v1432_v4, %v1228_v2  ;;  %v1430_v9 = vld [vmem:[#allocation5 + $0x1e4] sm:$0xf]  ;;  %v1084_v11 = vld [vmem:[#allocation5 + $0xc0] sm:$0xf] }
  0x1a   :  { %v1105_v8 = vor.u32 %v1398_v5, %v1102_v6  ;;  %v1230_v10 = vld [vmem:[#allocation5 + $0x1f0] sm:$0xf0]  ;;  %500 = vmatpush.bf16.msra.mxu0 %v1101_v3  ;;  %v1396_v13 = vld [vmem:[#allocation5 + $0xcc] sm:$0xf0]  ;;  %v1212_v14 = vld [vmem:[#allocation5 + $0x1c0] sm:$0xf] }
  0x1b   :  { %v1233_v12 = vor.u32 %v1430_v9, %v1230_v10  ;;  %v1428_v15 = vld [vmem:[#allocation5 + $0x1cc] sm:$0xf0]  ;;  %513 = vmatpush.bf16.msra.mxu1 %v1229_v7  ;;  %v1085_v16 = vor.u32 %v1396_v13, %v1084_v11  ;;  %v1394_v18 = vld [vmem:[#allocation5 + $0xc4] sm:$0xf]  ;;  %v1086_v19 = vld [vmem:[#allocation5 + $0xd0] sm:$0xf0] }
  0x1c   :  { %526 = vmatpush.bf16.msra.mxu2 %v1105_v8  ;;  %v1213_v17 = vor.u32 %v1428_v15, %v1212_v14  ;;  %v1426_v20 = vld [vmem:[#allocation5 + $0x1c4] sm:$0xf]  ;;  %v1089_v21 = vor.u32 %v1394_v18, %v1086_v19  ;;  %v1214_v22 = vld [vmem:[#allocation5 + $0x1d0] sm:$0xf0]  ;;  %v1068_v23 = vld [vmem:[#allocation5 + $0xa0] sm:$0xf] }
  0x1d   :  { %539 = vmatpush.bf16.msra.mxu3 %v1233_v12  ;;  %v1392_v24 = vld [vmem:[#allocation5 + $0xac] sm:$0xf0]  ;;  %v1217_v25 = vor.u32 %v1426_v20, %v1214_v22  ;;  %v1196_v26 = vld [vmem:[#allocation5 + $0x1a0] sm:$0xf]  ;;  %v1390_v28 = vld [vmem:[#allocation5 + $0xa4] sm:$0xf] }
  0x1e   :  { %v1424_v27 = vld [vmem:[#allocation5 + $0x1ac] sm:$0xf0]  ;;  %501 = vmatpush.bf16.msra.mxu0 %v1085_v16  ;;  %v1069_v29 = vor.u32 %v1392_v24, %v1068_v23  ;;  %v1070_v30 = vld [vmem:[#allocation5 + $0xb0] sm:$0xf0]  ;;  %v1422_v31 = vld [vmem:[#allocation5 + $0x1a4] sm:$0xf] }
  0x1f   :  { %v1198_v32 = vld [vmem:[#allocation5 + $0x1b0] sm:$0xf0]  ;;  %514 = vmatpush.bf16.msra.mxu1 %v1213_v17  ;;  %v1197_v33 = vor.u32 %v1424_v27, %v1196_v26  ;;  %v1073_v34 = vor.u32 %v1390_v28, %v1070_v30  ;;  %v1052_v35 = vld [vmem:[#allocation5 + $0x80] sm:$0xf]  ;;  %v1388_v36 = vld [vmem:[#allocation5 + $0x8c] sm:$0xf0] }
  0x20   :  { %527 = vmatpush.bf16.msra.mxu2 %v1089_v21  ;;  %v1180_v37 = vld [vmem:[#allocation5 + $0x180] sm:$0xf]  ;;  %v1201_v38 = vor.u32 %v1422_v31, %v1198_v32  ;;  %v1420_v39 = vld [vmem:[#allocation5 + $0x18c] sm:$0xf0]  ;;  %v1386_v40 = vld [vmem:[#allocation5 + $0x84] sm:$0xf]  ;;  %v1053_v44 = vor.u32 %v1388_v36, %v1052_v35 }
  0x21   :  { %540 = vmatpush.bf16.msra.mxu3 %v1217_v25  ;;  %v1054_v41 = vld [vmem:[#allocation5 + $0x90] sm:$0xf0]  ;;  %v1418_v42 = vld [vmem:[#allocation5 + $0x184] sm:$0xf]  ;;  %v1181_v45 = vor.u32 %v1420_v39, %v1180_v37  ;;  %v1036_v47 = vld [vmem:[#allocation5 + $0x60] sm:$0xf] }
  0x22   :  { %v1182_v43 = vld [vmem:[#allocation5 + $0x190] sm:$0xf0]  ;;  %502 = vmatpush.bf16.msra.mxu0 %v1069_v29  ;;  %v1057_v46 = vor.u32 %v1386_v40, %v1054_v41  ;;  %v1384_v48 = vld [vmem:[#allocation5 + $0x6c] sm:$0xf0]  ;;  %v1164_v49 = vld [vmem:[#allocation5 + $0x160] sm:$0xf] }
  0x23   :  { %515 = vmatpush.bf16.msra.mxu1 %v1197_v33  ;;  %v1185_v50 = vor.u32 %v1418_v42, %v1182_v43  ;;  %v1416_v51 = vld [vmem:[#allocation5 + $0x16c] sm:$0xf0]  ;;  %v1382_v52 = vld [vmem:[#allocation5 + $0x64] sm:$0xf]  ;;  %v1038_v53 = vld [vmem:[#allocation5 + $0x70] sm:$0xf0]  ;;  %v1037_v56 = vor.u32 %v1384_v48, %v1036_v47 }
  0x24   :  { %528 = vmatpush.bf16.msra.mxu2 %v1073_v34  ;;  %v1414_v54 = vld [vmem:[#allocation5 + $0x164] sm:$0xf]  ;;  %v1166_v55 = vld [vmem:[#allocation5 + $0x170] sm:$0xf0]  ;;  %v1165_v57 = vor.u32 %v1416_v51, %v1164_v49  ;;  %v1041_v58 = vor.u32 %v1382_v52, %v1038_v53  ;;  %v1020_v59 = vld [vmem:[#allocation5 + $0x40] sm:$0xf] }
  0x25   :  { %541 = vmatpush.bf16.msra.mxu3 %v1201_v38  ;;  %v1380_v60 = vld [vmem:[#allocation5 + $0x4c] sm:$0xf0]  ;;  %v1148_v61 = vld [vmem:[#allocation5 + $0x140] sm:$0xf]  ;;  %v1169_v62 = vor.u32 %v1414_v54, %v1166_v55  ;;  %v1378_v0 = vld [vmem:[#allocation5 + $0x44] sm:$0xf] }
  0x26   :  { %503 = vmatpush.bf16.msra.mxu0 %v1053_v44  ;;  %v1412_v63 = vld [vmem:[#allocation5 + $0x14c] sm:$0xf0]  ;;  %v1022_v1 = vld [vmem:[#allocation5 + $0x50] sm:$0xf0]  ;;  %v1410_v2 = vld [vmem:[#allocation5 + $0x144] sm:$0xf]  ;;  %v1021_v4 = vor.u32 %v1380_v60, %v1020_v59 }
  0x27   :  { %516 = vmatpush.bf16.msra.mxu1 %v1181_v45  ;;  %v1150_v3 = vld [vmem:[#allocation5 + $0x150] sm:$0xf0]  ;;  %v1149_v5 = vor.u32 %v1412_v63, %v1148_v61  ;;  %v1025_v6 = vor.u32 %v1378_v0, %v1022_v1  ;;  %v1004_v7 = vld [vmem:[#allocation5 + $0x20] sm:$0xf]  ;;  %v1376_v8 = vld [vmem:[#allocation5 + $0x2c] sm:$0xf0] }
  0x28   :  { %529 = vmatpush.bf16.msra.mxu2 %v1057_v46  ;;  %v1132_v9 = vld [vmem:[#allocation5 + $0x120] sm:$0xf]  ;;  %v1153_v10 = vor.u32 %v1410_v2, %v1150_v3  ;;  %v1408_v11 = vld [vmem:[#allocation5 + $0x12c] sm:$0xf0]  ;;  %v1374_v12 = vld [vmem:[#allocation5 + $0x24] sm:$0xf]  ;;  %v1005_v17 = vor.u32 %v1376_v8, %v1004_v7 }
  0x29   :  { %542 = vmatpush.bf16.msra.mxu3 %v1185_v50  ;;  %v1006_v13 = vld [vmem:[#allocation5 + $0x30] sm:$0xf0]  ;;  %v1406_v14 = vld [vmem:[#allocation5 + $0x124] sm:$0xf]  ;;  %v988_v16 = vld [vmem:[#allocation5] sm:$0xf]  ;;  %v1133_v21 = vor.u32 %v1408_v11, %v1132_v9 }
  0x2a   :  { %504 = vmatpush.bf16.msra.mxu0 %v1037_v56  ;;  %v1134_v15 = vld [vmem:[#allocation5 + $0x130] sm:$0xf0]  ;;  %v1372_v18 = vld [vmem:[#allocation5 + $0xc] sm:$0xf0]  ;;  %v1116_v19 = vld [vmem:[#allocation5 + $0x100] sm:$0xf]  ;;  %v1009_v22 = vor.u32 %v1374_v12, %v1006_v13 }
  0x2b   :  { %517 = vmatpush.bf16.msra.mxu1 %v1165_v57  ;;  %v1404_v20 = vld [vmem:[#allocation5 + $0x10c] sm:$0xf0]  ;;  %v1370_v23 = vld [vmem:[#allocation5 + $0x4] sm:$0xf]  ;;  %v990_v24 = vld [vmem:[#allocation5 + $0x10] sm:$0xf0]  ;;  %v1137_v26 = vor.u32 %v1406_v14, %v1134_v15  ;;  %v989_v33 = vor.u32 %v1372_v18, %v988_v16 }
  0x2c   :  { %530 = vmatpush.bf16.msra.mxu2 %v1041_v58  ;;  %v1402_v25 = vld [vmem:[#allocation5 + $0x104] sm:$0xf]  ;;  %v1118_v27 = vld [vmem:[#allocation5 + $0x110] sm:$0xf0]  ;;  %v1108_v28 = vld [vmem:[#allocation5 + $0xe8] sm:$0xf]  ;;  %v1117_v37 = vor.u32 %v1404_v20, %v1116_v19  ;;  %v993_v38 = vor.u32 %v1370_v23, %v990_v24 }
  0x2d   :  { %543 = vmatpush.bf16.msra.mxu3 %v1169_v62  ;;  %v1401_v29 = vld [vmem:[#allocation5 + $0xf4] sm:$0xf0]  ;;  %v1236_v30 = vld [vmem:[#allocation5 + $0x1e8] sm:$0xf]  ;;  %v98_v32 = vld [vmem:[#allocation2] sm:$0x3]  ;;  %v1121_v42 = vor.u32 %v1402_v25, %v1118_v27 }
  0x2e   :  { %505 = vmatpush.bf16.msra.mxu0 %v1021_v4  ;;  %v1433_v31 = vld [vmem:[#allocation5 + $0x1f4] sm:$0xf0]  ;;  %v1399_v34 = vld [vmem:[#allocation5 + $0xec] sm:$0xf]  ;;  %v1110_v35 = vld [vmem:[#allocation5 + $0xf8] sm:$0xf0]  ;;  %v1109_v43 = vor.u32 %v1401_v29, %v1108_v28 }
  0x2f   :  { %518 = vmatpush.bf16.msra.mxu1 %v1149_v5  ;;  %v100_v36 = vperm.slane %v98_v32, 0  ;;  %v1431_v39 = vld [vmem:[#allocation5 + $0x1ec] sm:$0xf]  ;;  %v1238_v40 = vld [vmem:[#allocation5 + $0x1f8] sm:$0xf0]  ;;  %v101_v41 = vperm.slane %v98_v32, 1  ;;  %v1237_v44 = vor.u32 %v1433_v31, %v1236_v30  ;;  %v1113_v45 = vor.u32 %v1399_v34, %v1110_v35 }
  0x30   :  { %531 = vmatpush.bf16.msra.mxu2 %v1025_v6  ;;  %v1092_v46 = vld [vmem:[#allocation5 + $0xc8] sm:$0xf]  ;;  %v1397_v47 = vld [vmem:[#allocation5 + $0xd4] sm:$0xf0]  ;;  %v1241_v49 = vor.u32 %v1431_v39, %v1238_v40  ;;  %v1395_v51 = vld [vmem:[#allocation5 + $0xcc] sm:$0xf] }
  0x31   :  { %544 = vmatpush.bf16.msra.mxu3 %v1153_v10  ;;  %v1220_v48 = vld [vmem:[#allocation5 + $0x1c8] sm:$0xf]  ;;  %v1429_v50 = vld [vmem:[#allocation5 + $0x1d4] sm:$0xf0]  ;;  %v1094_v52 = vld [vmem:[#allocation5 + $0xd8] sm:$0xf0]  ;;  %v1696_v53 = vpack.c.bf16 %v100_v36, %v100_v36  ;;  %v1698_v56 = vpack.c.bf16 %v101_v41, %v101_v41  ;;  %v1093_v57 = vor.u32 %v1397_v47, %v1092_v46 }
  0x32   :  { %506 = vmatpush.bf16.msra.mxu0 %v1005_v17  ;;  %v1427_v54 = vld [vmem:[#allocation5 + $0x1cc] sm:$0xf]  ;;  %v1222_v55 = vld [vmem:[#allocation5 + $0x1d8] sm:$0xf0]  ;;  %v1221_v58 = vor.u32 %v1429_v50, %v1220_v48  ;;  %v1097_v59 = vor.u32 %v1395_v51, %v1094_v52  ;;  %v1076_v60 = vld [vmem:[#allocation5 + $0xa8] sm:$0xf] }
  0x33   :  { %519 = vmatpush.bf16.msra.mxu1 %v1133_v21  ;;  %v1393_v61 = vld [vmem:[#allocation5 + $0xb4] sm:$0xf0]  ;;  %v1204_v62 = vld [vmem:[#allocation5 + $0x1a8] sm:$0xf]  ;;  %v1225_v63 = vor.u32 %v1427_v54, %v1222_v55  ;;  %v1391_v1 = vld [vmem:[#allocation5 + $0xac] sm:$0xf] }
  0x34   :  { %532 = vmatpush.bf16.msra.mxu2 %v1009_v22  ;;  %v1425_v0 = vld [vmem:[#allocation5 + $0x1b4] sm:$0xf0]  ;;  %v1078_v2 = vld [vmem:[#allocation5 + $0xb8] sm:$0xf0]  ;;  %v1423_v3 = vld [vmem:[#allocation5 + $0x1ac] sm:$0xf]  ;;  %v1077_v5 = vor.u32 %v1393_v61, %v1076_v60 }
  0x35   :  { %545 = vmatpush.bf16.msra.mxu3 %v1137_v26  ;;  %v1206_v4 = vld [vmem:[#allocation5 + $0x1b8] sm:$0xf0]  ;;  %v1205_v6 = vor.u32 %v1425_v0, %v1204_v62  ;;  %v1081_v7 = vor.u32 %v1391_v1, %v1078_v2  ;;  %v1060_v8 = vld [vmem:[#allocation5 + $0x88] sm:$0xf]  ;;  %v1389_v9 = vld [vmem:[#allocation5 + $0x94] sm:$0xf0] }
  0x36   :  { %507 = vmatpush.bf16.msra.mxu0 %v989_v33  ;;  %v1188_v10 = vld [vmem:[#allocation5 + $0x188] sm:$0xf]  ;;  %v1209_v11 = vor.u32 %v1423_v3, %v1206_v4  ;;  %v1421_v12 = vld [vmem:[#allocation5 + $0x194] sm:$0xf0]  ;;  %v1387_v13 = vld [vmem:[#allocation5 + $0x8c] sm:$0xf]  ;;  %v1061_v17 = vor.u32 %v1389_v9, %v1060_v8 }
  0x37   :  { %520 = vmatpush.bf16.msra.mxu1 %v1117_v37  ;;  %v1062_v14 = vld [vmem:[#allocation5 + $0x98] sm:$0xf0]  ;;  %v1419_v15 = vld [vmem:[#allocation5 + $0x18c] sm:$0xf]  ;;  %v1189_v18 = vor.u32 %v1421_v12, %v1188_v10  ;;  %v1044_v20 = vld [vmem:[#allocation5 + $0x68] sm:$0xf] }
  0x38   :  { %533 = vmatpush.bf16.msra.mxu2 %v993_v38  ;;  %v1190_v16 = vld [vmem:[#allocation5 + $0x198] sm:$0xf0]  ;;  %v1065_v19 = vor.u32 %v1387_v13, %v1062_v14  ;;  %v1385_v21 = vld [vmem:[#allocation5 + $0x74] sm:$0xf0]  ;;  %v1172_v22 = vld [vmem:[#allocation5 + $0x168] sm:$0xf] }
  0x39   :  { %546 = vmatpush.bf16.msra.mxu3 %v1121_v42  ;;  %508 = vmatmul.bf16.vlgmr.msra.gmra.mxu0 %v1696_v53  ;;  %v1193_v23 = vor.u32 %v1419_v15, %v1190_v16  ;;  %v1417_v24 = vld [vmem:[#allocation5 + $0x174] sm:$0xf0]  ;;  %v1383_v25 = vld [vmem:[#allocation5 + $0x6c] sm:$0xf]  ;;  %v1046_v26 = vld [vmem:[#allocation5 + $0x78] sm:$0xf0]  ;;  %v1045_v29 = vor.u32 %v1385_v21, %v1044_v20 }
  0x3a   :  { %552 = vmatpush.bf16.msrb.mxu0 %v1109_v43  ;;  %521 = vmatmul.bf16.vlgmr.msra.gmra.mxu1 %v1698_v56  ;;  %v1415_v27 = vld [vmem:[#allocation5 + $0x16c] sm:$0xf]  ;;  %v1174_v28 = vld [vmem:[#allocation5 + $0x178] sm:$0xf0]  ;;  %v1173_v30 = vor.u32 %v1417_v24, %v1172_v22  ;;  %v1049_v31 = vor.u32 %v1383_v25, %v1046_v26  ;;  %v1028_v32 = vld [vmem:[#allocation5 + $0x48] sm:$0xf] }
  0x3b   :  { %565 = vmatpush.bf16.msrb.mxu1 %v1237_v44  ;;  %534 = vmatmul.bf16.vlgmr.msra.gmra.mxu2 %v1696_v53  ;;  %v1381_v33 = vld [vmem:[#allocation5 + $0x54] sm:$0xf0]  ;;  %v1156_v34 = vld [vmem:[#allocation5 + $0x148] sm:$0xf]  ;;  %v1177_v35 = vor.u32 %v1415_v27, %v1174_v28  ;;  %v1379_v37 = vld [vmem:[#allocation5 + $0x4c] sm:$0xf] }
  0x3c   :  { %578 = vmatpush.bf16.msrb.mxu2 %v1113_v45  ;;  %547 = vmatmul.bf16.vlgmr.msra.gmra.mxu3 %v1698_v56  ;;  %v1413_v36 = vld [vmem:[#allocation5 + $0x154] sm:$0xf0]  ;;  %v1030_v38 = vld [vmem:[#allocation5 + $0x58] sm:$0xf0]  ;;  %v1411_v39 = vld [vmem:[#allocation5 + $0x14c] sm:$0xf]  ;;  %v1029_v41 = vor.u32 %v1381_v33, %v1028_v32 }
  0x3d   :  { %591 = vmatpush.bf16.msrb.mxu3 %v1241_v49  ;;  %v1158_v40 = vld [vmem:[#allocation5 + $0x158] sm:$0xf0]  ;;  %v1157_v42 = vor.u32 %v1413_v36, %v1156_v34  ;;  %v1033_v43 = vor.u32 %v1379_v37, %v1030_v38  ;;  %v1012_v44 = vld [vmem:[#allocation5 + $0x28] sm:$0xf]  ;;  %v1377_v45 = vld [vmem:[#allocation5 + $0x34] sm:$0xf0] }
  0x3e   :  { %553 = vmatpush.bf16.msrb.mxu0 %v1093_v57  ;;  %v1140_v46 = vld [vmem:[#allocation5 + $0x128] sm:$0xf]  ;;  %v1161_v47 = vor.u32 %v1411_v39, %v1158_v40  ;;  %v1409_v48 = vld [vmem:[#allocation5 + $0x134] sm:$0xf0]  ;;  %v1375_v49 = vld [vmem:[#allocation5 + $0x2c] sm:$0xf]  ;;  %v1013_v54 = vor.u32 %v1377_v45, %v1012_v44 }
  0x3f   :  { %566 = vmatpush.bf16.msrb.mxu1 %v1221_v58  ;;  %v1014_v50 = vld [vmem:[#allocation5 + $0x38] sm:$0xf0]  ;;  %v1407_v51 = vld [vmem:[#allocation5 + $0x12c] sm:$0xf]  ;;  %v1141_v55 = vor.u32 %v1409_v48, %v1140_v46  ;;  %v996_v58 = vld [vmem:[#allocation5 + $0x8] sm:$0xf] }
  0x40   :  { %579 = vmatpush.bf16.msrb.mxu2 %v1097_v59  ;;  %v1142_v52 = vld [vmem:[#allocation5 + $0x138] sm:$0xf0]  ;;  %v1017_v57 = vor.u32 %v1375_v49, %v1014_v50  ;;  %v1373_v59 = vld [vmem:[#allocation5 + $0x14] sm:$0xf0]  ;;  %v1124_v60 = vld [vmem:[#allocation5 + $0x108] sm:$0xf] }
  0x41   :  { %592 = vmatpush.bf16.msrb.mxu3 %v1225_v63  ;;  %v1145_v61 = vor.u32 %v1407_v51, %v1142_v52  ;;  %v1405_v62 = vld [vmem:[#allocation5 + $0x114] sm:$0xf0]  ;;  %v1371_v63 = vld [vmem:[#allocation5 + $0xc] sm:$0xf]  ;;  %v998_v0 = vld [vmem:[#allocation5 + $0x18] sm:$0xf0]  ;;  %v997_v3 = vor.u32 %v1373_v59, %v996_v58 }
  0x42   :  { %554 = vmatpush.bf16.msrb.mxu0 %v1077_v5  ;;  %v1403_v1 = vld [vmem:[#allocation5 + $0x10c] sm:$0xf]  ;;  %v1126_v2 = vld [vmem:[#allocation5 + $0x118] sm:$0xf0]  ;;  %v1125_v4 = vor.u32 %v1405_v62, %v1124_v60  ;;  %v1001_v5 = vor.u32 %v1371_v63, %v998_v0  ;;  %v1440_v10 = vld [vmem:[#allocation8 + $0x30] sm:$0xff]  ;;  %vm921_vm0 = vcmask 1040384  }
  0x43   :  { %567 = vmatpush.bf16.msrb.mxu1 %v1205_v6  ;;  %v1129_v6 = vor.u32 %v1403_v1, %v1126_v2  ;;  %v1449_v8 = vld [vmem:[#allocation8 + $0x78] sm:$0xff]  ;;  %v1439_v12 = vld [vmem:[#allocation8 + $0x28] sm:$0xff]  ;;  %v1438_v14 = vld [vmem:[#allocation8 + $0x20] sm:$0xff]  ;;  %s974_s28 = sshll.u32 %s1720_s6, 4  ;;  %s975_s28 = int_to_ptr.hbm [resolvable:$true] %s974_s28 }
  0x44   :  { %580 = vmatpush.bf16.msrb.mxu2 %v1081_v7  ;;  %v1441_v7 = vld [vmem:[#allocation8 + $0x38] sm:$0xff]  ;;  %v1447_v13 = vld [vmem:[#allocation8 + $0x68] sm:$0xff]  ;;  %v1446_v15 = vld [vmem:[#allocation8 + $0x60] sm:$0xff] }
  0x45   :  { %593 = vmatpush.bf16.msrb.mxu3 %v1209_v11  ;;  %v1457_v9 = vld [vmem:[#allocation8 + $0xb8] sm:$0xff]  ;;  %v1448_v11 = vld [vmem:[#allocation8 + $0x70] sm:$0xff]  ;;  %v1443_v20 = vld [vmem:[#allocation8 + $0x48] sm:$0xff] }
  0x46   :  { %555 = vmatpush.bf16.msrb.mxu0 %v1061_v17  ;;  %v1437_v16 = vld [vmem:[#allocation8 + $0x18] sm:$0xff]  ;;  %v1434_v22 = vld [vmem:[#allocation8] sm:$0xff]  ;;  %v1464_v25 = vld [vmem:[#allocation8 + $0xf0] sm:$0xff] }
  0x47   :  { %568 = vmatpush.bf16.msrb.mxu1 %v1189_v18  ;;  %v1445_v17 = vld [vmem:[#allocation8 + $0x58] sm:$0xff]  ;;  %v1436_v18 = vld [vmem:[#allocation8 + $0x10] sm:$0xff]  ;;  %v1442_v24 = vld [vmem:[#allocation8 + $0x40] sm:$0xff] }
  0x48   :  { %581 = vmatpush.bf16.msrb.mxu2 %v1065_v19  ;;  %v1456_v19 = vld [vmem:[#allocation8 + $0xb0] sm:$0xff]  ;;  %v1465_v21 = vld [vmem:[#allocation8 + $0xf8] sm:$0xff]  ;;  %v1454_v26 = vld [vmem:[#allocation8 + $0xa0] sm:$0xff] }
  0x49   :  { %594 = vmatpush.bf16.msrb.mxu3 %v1193_v23  ;;  %v1455_v23 = vld [vmem:[#allocation8 + $0xa8] sm:$0xff]  ;;  %v1453_v28 = vld [vmem:[#allocation8 + $0x98] sm:$0xff]  ;;  %v1460_v36 = vld [vmem:[#allocation8 + $0xd0] sm:$0xff] }
  0x4a   :  { %556 = vmatpush.bf16.msrb.mxu0 %v1045_v29  ;;  %v1463_v27 = vld [vmem:[#allocation8 + $0xe8] sm:$0xff]  ;;  %v1462_v29 = vld [vmem:[#allocation8 + $0xe0] sm:$0xff]  ;;  %v1461_v32 = vld [vmem:[#allocation8 + $0xd8] sm:$0xff] }
  0x4b   :  { %569 = vmatpush.bf16.msrb.mxu1 %v1173_v30  ;;  %v1452_v30 = vld [vmem:[#allocation8 + $0x90] sm:$0xff]  ;;  %v1451_v34 = vld [vmem:[#allocation8 + $0x88] sm:$0xff]  ;;  %v1450_v40 = vld [vmem:[#allocation8 + $0x80] sm:$0xff] }
  0x4c   :  { %582 = vmatpush.bf16.msrb.mxu2 %v1049_v31  ;;  %v170_v31 = vld [vmem:[#allocation7] sm:$0xf]  ;;  %v1458_v50 = vld [vmem:[#allocation8 + $0xc0] sm:$0xff] }
  0x4d   :  { %595 = vmatpush.bf16.msrb.mxu3 %v1177_v35  ;;  %v492_v33 = vperm.slane %v170_v31, 0  ;;  %v493_v39 = vperm.slane %v170_v31, 1  ;;  %v494_v58 = vperm.slane %v170_v31, 2  ;;  %v495_v63 = vperm.slane %v170_v31, 3 }
  0x4e   :  { %557 = vmatpush.bf16.msrb.mxu0 %v1029_v41 }
  0x4f   :  { %570 = vmatpush.bf16.msrb.mxu1 %v1157_v42  ;;  %v1459_v42 = vld [vmem:[#allocation8 + $0xc8] sm:$0xff] }
  0x50   :  { %583 = vmatpush.bf16.msrb.mxu2 %v1033_v43 }
  0x51   :  { %596 = vmatpush.bf16.msrb.mxu3 %v1161_v47 }
  0x52   :  { %558 = vmatpush.bf16.msrb.mxu0 %v1013_v54 }
  0x53   :  { %571 = vmatpush.bf16.msrb.mxu1 %v1141_v55 }
  0x54   :  { %584 = vmatpush.bf16.msrb.mxu2 %v1017_v57 }
  0x55   :  { %597 = vmatpush.bf16.msrb.mxu3 %v1145_v61 }
  0x56   :  { %559 = vmatpush.bf16.msrb.mxu0 %v997_v3 }
  0x57   :  { %572 = vmatpush.bf16.msrb.mxu1 %v1125_v4 }
  0x58   :  { %585 = vmatpush.bf16.msrb.mxu2 %v1001_v5 }
  0x59   :  { %598 = vmatpush.bf16.msrb.mxu3 %v1129_v6  ;;  %560 = vmatmul.bf16.vlgmr.msrb.gmra.mxu0 %v1696_v53 }
  0x5a   :  { %869 = vmatpush.bf16.msra.mxu0 %v1441_v7  ;;  %573 = vmatmul.bf16.vlgmr.msrb.gmra.mxu1 %v1698_v56 }
  0x5b   :  { %882 = vmatpush.bf16.msra.mxu1 %v1449_v8  ;;  %586 = vmatmul.bf16.vlgmr.msrb.gmra.mxu2 %v1696_v53  ;;  %v1444_v53 = vld [vmem:[#allocation8 + $0x50] sm:$0xff] }
  0x5c   :  { %599 = vmatmul.bf16.vlgmr.msrb.gmra.mxu3 %v1698_v56  ;;  %895 = vmatpush.bf16.msra.mxu2 %v1457_v9  ;;  %v1435_v56 = vld [vmem:[#allocation8 + $0x8] sm:$0xff] }
  0x5d   :  { %908 = vmatpush.bf16.msra.mxu3 %v1465_v21  ;;  %v936_v21 = vld [vmem:[#allocation10 + $0x40] sm:$0xff] }
  0x5e   :  { %870 = vmatpush.bf16.msra.mxu0 %v1440_v10 }
  0x5f   :  { %883 = vmatpush.bf16.msra.mxu1 %v1448_v11 }
  0x60   :  { %896 = vmatpush.bf16.msra.mxu2 %v1456_v19  ;;  %v938_v19 = vld [vmem:[#allocation10 + $0x50] sm:$0xff] }
  0x61   :  { %909 = vmatpush.bf16.msra.mxu3 %v1464_v25 }
  0x62   :  { %871 = vmatpush.bf16.msra.mxu0 %v1439_v12 }
  0x63   :  { %884 = vmatpush.bf16.msra.mxu1 %v1447_v13 }
  0x64   :  { %897 = vmatpush.bf16.msra.mxu2 %v1455_v23  ;;  %v935_v23 = vld [vmem:[#allocation10 + $0x38] sm:$0xff] }
  0x65   :  { %910 = vmatpush.bf16.msra.mxu3 %v1463_v27 }
  0x66   :  { %872 = vmatpush.bf16.msra.mxu0 %v1438_v14 }
  0x67   :  { %885 = vmatpush.bf16.msra.mxu1 %v1446_v15 }
  0x68   :  { %898 = vmatpush.bf16.msra.mxu2 %v1454_v26 }
  0x69   :  { %911 = vmatpush.bf16.msra.mxu3 %v1462_v29 }
  0x6a   :  { %873 = vmatpush.bf16.msra.mxu0 %v1437_v16  ;;  %v943_v16 = vld [vmem:[#allocation10 + $0x78] sm:$0xff] }
  0x6b   :  { %886 = vmatpush.bf16.msra.mxu1 %v1445_v17  ;;  %v942_v17 = vld [vmem:[#allocation10 + $0x70] sm:$0xff] }
  0x6c   :  { %899 = vmatpush.bf16.msra.mxu2 %v1453_v28 }
  0x6d   :  { %912 = vmatpush.bf16.msra.mxu3 %v1461_v32 }
  0x6e   :  { %874 = vmatpush.bf16.msra.mxu0 %v1436_v18  ;;  %v941_v18 = vld [vmem:[#allocation10 + $0x68] sm:$0xff] }
  0x6f   :  { %887 = vmatpush.bf16.msra.mxu1 %v1444_v53  ;;  %v940_v53 = vld [vmem:[#allocation10 + $0x60] sm:$0xff] }
  0x70   :  { %900 = vmatpush.bf16.msra.mxu2 %v1452_v30 }
  0x71   :  { %913 = vmatpush.bf16.msra.mxu3 %v1460_v36  ;;  %v931_v36 = vld [vmem:[#allocation10 + $0x18] sm:$0xff] }
  0x72   :  { %875 = vmatpush.bf16.msra.mxu0 %v1435_v56  ;;  %v939_v56 = vld [vmem:[#allocation10 + $0x58] sm:$0xff] }
  0x73   :  { %888 = vmatpush.bf16.msra.mxu1 %v1443_v20  ;;  %v937_v20 = vld [vmem:[#allocation10 + $0x48] sm:$0xff] }
  0x74   :  { %901 = vmatpush.bf16.msra.mxu2 %v1451_v34  ;;  %v933_v34 = vld [vmem:[#allocation10 + $0x28] sm:$0xff] }
  0x75   :  { %914 = vmatpush.bf16.msra.mxu3 %v1459_v42 }
  0x76   :  { %876 = vmatpush.bf16.msra.mxu0 %v1434_v22  ;;  %v676_v22 = vld [vmem:[%s1718_s4] sm:$0x1]  ;;  %s1645_s4 = smov [#allocation11]  }
  0x77   :  { %889 = vmatpush.bf16.msra.mxu1 %v1442_v24  ;;  %v934_v24 = vld [vmem:[#allocation10 + $0x30] sm:$0xff]  ;;  %s972_s25 = sshll.u32 %s1645_s4, 4  ;;  %s973_s25 = int_to_ptr.vmem [resolvable:$true] %s972_s25 }
  0x78   :  { %902 = vmatpush.bf16.msra.mxu2 %v1450_v40 }
  0x79   :  { %915 = vmatpush.bf16.msra.mxu3 %v1458_v50 }
  0x7a   :  { %944 = vmatpush.msrb.mxu0 %v943_v16 }
  0x7c   :  { %945 = vmatpush.msrb.mxu0 %v942_v17 }
  0x7e   :  { %946 = vmatpush.msrb.mxu0 %v941_v18 }
  0x80   :  { %947 = vmatpush.msrb.mxu0 %v940_v53 }
  0x82   :  { %948 = vmatpush.msrb.mxu0 %v939_v56 }
  0x84   :  { %949 = vmatpush.msrb.mxu0 %v938_v19 }
  0x86   :  { %950 = vmatpush.msrb.mxu0 %v937_v20 }
  0x88   :  { %951 = vmatpush.msrb.mxu0 %v936_v21 }
  0x8a   :  { %952 = vmatpush.msrb.mxu0 %v935_v23 }
  0x8c   :  { %953 = vmatpush.msrb.mxu0 %v934_v24 }
  0x8e   :  { %954 = vmatpush.msrb.mxu0 %v933_v34 }
  0xb6   :  { %v509_v35 = vpop.f32.mrf.mxu0 }
  0xb7   :  { %v510_v37 = vadd.f32 %v509_v35, %v492_v33  ;;  %v522_v38 = vpop.f32.mrf.mxu1  ;;  %v932_v35 = vld [vmem:[#allocation10 + $0x20] sm:$0xff] }
  0xb8   :  { %955 = vmatpush.msrb.mxu0 %v932_v35 }
  0xb9   :  { %v523_v41 = vadd.f32 %v522_v38, %v510_v37  ;;  %v930_v37 = vld [vmem:[#allocation10 + $0x10] sm:$0xff]  ;;  %v929_v38 = vld [vmem:[#allocation10 + $0x8] sm:$0xff] }
  0xba   :  { %956 = vmatpush.msrb.mxu0 %v931_v36 }
  0xbb   :  { %v604_v43 = vmax.f32 %v523_v41, 0.0 }
  0xbc   :  { %957 = vmatpush.msrb.mxu0 %v930_v37 }
  0xbd   :  { %v608_v47 = vpack.c.bf16 %v604_v43, %v604_v43 }
  0xbe   :  { %v535_v44 = vpop.f32.mrf.mxu2  ;;  %v511_v49 = vpop.f32.mrf.mxu0  ;;  %958 = vmatpush.msrb.mxu0 %v929_v38 }
  0xbf   :  { %v536_v45 = vadd.f32 %v535_v44, %v493_v39  ;;  %v548_v46 = vpop.f32.mrf.mxu3  ;;  %877 = vmatmul.bf16.vlgmr.msra.gmra.mxu0 %v608_v47  ;;  %v524_v51 = vpop.f32.mrf.mxu1  ;;  %v928_v39 = vld [vmem:[#allocation10] sm:$0xff] }
  0xc0   :  { %959 = vmatpush.msrb.mxu0 %v928_v39 }
  0xc1   :  { %v549_v48 = vadd.f32 %v548_v46, %v536_v45 }
  0xc3   :  { %v605_v52 = vmax.f32 %v549_v48, 0.0 }
  0xc5   :  { %v609_v54 = vpack.c.bf16 %v605_v52, %v605_v52 }
  0xc6   :  { %v537_v55 = vpop.f32.mrf.mxu2 }
  0xc7   :  { %890 = vmatmul.bf16.vlgmr.msra.gmra.mxu1 %v609_v54  ;;  %v550_v57 = vpop.f32.mrf.mxu3 }
  0xd6   :  { %v561_v59 = vpop.f32.mrf.mxu0 }
  0xd7   :  { %v562_v60 = vadd.f32 %v561_v59, %v494_v58  ;;  %v574_v61 = vpop.f32.mrf.mxu1 }
  0xd9   :  { %v575_v62 = vadd.f32 %v574_v61, %v562_v60 }
  0xdb   :  { %v606_v0 = vmax.f32 %v575_v62, 0.0 }
  0xdd   :  { %v610_v1 = vpack.c.bf16 %v606_v0, %v606_v0 }
  0xde   :  { %v587_v2 = vpop.f32.mrf.mxu2  ;;  %v563_v5 = vpop.f32.mrf.mxu0 }
  0xdf   :  { %v588_v3 = vadd.f32 %v587_v2, %v495_v63  ;;  %v600_v4 = vpop.f32.mrf.mxu3  ;;  %v576_v6 = vpop.f32.mrf.mxu1  ;;  %903 = vmatmul.bf16.vlgmr.msra.gmra.mxu2 %v610_v1 }
  0xe1   :  { %v601_v7 = vadd.f32 %v600_v4, %v588_v3 }
  0xe3   :  { %v607_v8 = vmax.f32 %v601_v7, 0.0 }
  0xe5   :  { %v611_v9 = vpack.c.bf16 %v607_v8, %v607_v8 }
  0xe6   :  { %v589_v10 = vpop.f32.mrf.mxu2 }
  0xe7   :  { %v602_v11 = vpop.f32.mrf.mxu3  ;;  %916 = vmatmul.bf16.vlgmr.msra.gmra.mxu3 %v611_v9 }
 0x13c   :  { %v878_v12 = vpop.f32.mrf.mxu0 }
 0x13d   :  { %v879_v25 = vadd.f32 %v878_v12, %v676_v22 }
 0x144   :  { %v891_v13 = vpop.f32.mrf.mxu1  ;;  %v880_v14 = vpop.f32.mrf.mxu0 }
 0x145   :  { %v892_v27 = vadd.f32 %v891_v13, %v879_v25 }
 0x14c   :  { %v893_v15 = vpop.f32.mrf.mxu1 }
 0x162   :  { %v904_v26 = vpop.f32.mrf.mxu2 }
 0x163   :  { %v905_v28 = vadd.f32 %v904_v26, %v892_v27 }
 0x16a   :  { %v917_v29 = vpop.f32.mrf.mxu3  ;;  %v906_v31 = vpop.f32.mrf.mxu2 }
 0x16b   :  { %v918_v30 = vadd.f32 %v917_v29, %v905_v28 }
 0x16d   :  { %v922_v32 = vsel %vm921_vm0, %v918_v30, -inf }
 0x16e   :  { %923 = vmax.xlane.f32.xlu0 %v922_v32 }
 0x172   :  { %v919_v33 = vpop.f32.mrf.mxu3 }
 0x1e1   :  { %v924_v40 = vpop.xlane.xlu0 %923 }
 0x1e2   :  { %v925_v41 = vsub.f32 %v918_v30, %v924_v40 }
 0x1e4   :  { %v926_v42 = vmul.f32 1.442695, %v925_v41 }
 0x1e6   :  { %1478 = vpow2.f32 %v926_v42 }
 0x1ec   :  { %v1479_v43 = vpop.eup %1478 }
 0x1ed   :  { %960 = vmatmul.f32.vlgmr.msrb.gmra.mxu0 %v1479_v43 }
 0x26a   :  { %v961_v44 = vpop.f32.mrf.mxu0 }
 0x26b   :  { %1480 = vrcp.f32 %v961_v44 }
 0x271   :  { %v1481_v45 = vpop.eup %1480 }
 0x272   :  { %v965_v46 = vmul.f32 %v1481_v45, %v1479_v43 }
 0x274   :  { %966 = vst [vmem:[#allocation11] sm:$0x1] %v965_v46 }
 0x275   :  { %977 = dma.vmem_to_hbm [thread:$0]  %s973_s25, 16, %s975_s28, [#allocation4]  }
 0x276   :  { %1632 = dma.done.wait [#allocation4], 16  }
 0x277   :  { %1633 = vsyncadd [#allocation4], 4294967280 }
 0x278   :  { %982 = vsyncpa [#allocation3], 1 }
 0x279   :  { %983 = vsyncpa [#allocation6], 1 }
 0x27a   :  { %984 = vsyncpa [#allocation9], 1 }
 0x27b   :  { %985 = vsyncpa [#allocation4], 1 }

</bundles_post_ra>
